<compile_context>
chip_gen: v7x
topology: tpu7x:2x2x1
jax: 0.10.0
libtpu: 0.0.40
codegen_flags: <defaults>
</compile_context>

<pallas_src>
import math
import functools

import jax
import jax.numpy as jnp
from jax.experimental import pallas as pl
from jax.experimental.pallas import tpu as pltpu


# ------------------------------ glue helpers -------------------------------

def _round_up(x: int, m: int) -> int:
    return ((x + m - 1) // m) * m


def _fwht(v):
    """Unnormalized fast Walsh-Hadamard transform along the last axis."""
    n = v.shape[-1]
    h = 1
    while h < n:
        v = v.reshape(*v.shape[:-1], n // (2 * h), 2, h)
        a, b = v[..., 0, :], v[..., 1, :]
        v = jnp.concatenate([a + b, a - b], axis=-1).reshape(*v.shape[:-3], n)
        h *= 2
    return v


def _fold_bh4_weights(weight, padded, block_size):
    """Fold the 4 rounds of (block-diag matmul -> unnormalized WHT) into one
    (D, D) matrix per repeat, so the kernel does a single x @ M[r].
    Applied row-wise to the identity via the FWHT (no dense D^3 matmuls).
    f32 glue; in production precompute once per weight update."""
    num_repeat = weight.shape[0]
    nb = padded // block_size
    mats = []
    for r in range(num_repeat):
        M = jnp.eye(padded, dtype=jnp.float32)
        for i in range(4):
            w_i = weight[r, i].astype(jnp.float32)          # (nb, bs, bs)
            Mr = M.reshape(padded, nb, block_size)
            # v'[.., k, t] = sum_s v[.., k, s] * w[k, t, s]
            Mr = jnp.einsum('jks,kts->jkt', Mr, w_i)
            M = _fwht(Mr.reshape(padded, padded))
        mats.append(M)
    return jnp.stack(mats)                                   # (nr, D, D) f32


# ------------------------------ Pallas kernels ------------------------------

def _bh4_packed_kernel(x_ref, m_ref, b_ref, o_ref, *, decay, nr):
    # packed path: grid = (num_batch_tiles,)
    # x_ref: (TB, D) bf16 ; m_ref: (D, nr*D) bf16 ; b_ref: (1, nr*D) f32
    # o_ref: (TB, nr*D) f32
    x16 = x_ref[...]
    y = jnp.dot(x16, m_ref[...], preferred_element_type=jnp.float32)
    x32 = x16.astype(jnp.float32)
    res = x32 if nr == 1 else jnp.concatenate([x32] * nr, axis=-1)
    # single lane-dense full-width store (no masked partial stores)
    o_ref[...] = decay * y + (1.0 - decay) * res + b_ref[...]


def _bh4_repeat_kernel(x_ref, m_ref, b_ref, o_ref, *, decay):
    # fallback path: grid = (num_repeat, num_batch_tiles)
    # x_ref: (TB, D) bf16 ; m_ref: (1, D, D) bf16 ; b_ref: (1, D) f32
    # o_ref: (TB, D) f32
    x16 = x_ref[...]
    y = jnp.dot(x16, m_ref[0], preferred_element_type=jnp.float32)
    o_ref[...] = decay * y + (1.0 - decay) * x16.astype(jnp.float32) + b_ref[...]


# -------------------------------- module fwd --------------------------------

def bh4_module_forward(xs, weight, bias, *, in_dim, out_dim, block_size,
                       decay_coeff=0.7, force_general=False):
    """Equivalent of BH4.forward(xs) from the PyTorch module."""
    lead_shape = xs.shape[:-1]
    dim = xs.shape[-1]
    assert dim == in_dim
    x = xs.reshape(-1, dim)
    B = x.shape[0]

    padded = int(2 ** math.ceil(math.log2(in_dim)))
    num_repeat = max(1, int(math.ceil(out_dim / padded)))
    num_block = padded // block_size
    assert weight.shape == (num_repeat, 4, num_block, block_size, block_size)
    out_w = num_repeat * padded

    # bf16 activations straight into the MXU; residual recovered in-kernel.
    x = x.astype(jnp.bfloat16)
    if dim < padded:
        x = jnp.pad(x, ((0, 0), (0, padded - dim)))

    # fold 4 rounds -> one (D, D) matmul per repeat, bf16 MXU inputs
    m = _fold_bh4_weights(weight, padded, block_size).astype(jnp.bfloat16)

    # bias padded to the full kernel output width, fused into the kernel
    bias_pad = jnp.zeros((1, out_w), jnp.float32)
    bias_pad = bias_pad.at[0, :out_dim].set(bias.astype(jnp.float32))

    # --- choose path + batch tile under a conservative VMEM budget ---------
    VMEM_BUDGET = 40 * 1024 * 1024      # conservative for v7x (64 MiB physical)

    def packed_bytes(tb):
        return (2 * padded * out_w * 2          # M_all buffers
                + 2 * tb * padded * 2           # x tiles (double-buffered)
                + 2 * tb * out_w * 4            # out tiles
                + 2 * out_w * 4                 # bias
                + 3 * tb * out_w * 4)           # in-kernel intermediates

    def general_bytes(tb):
        return (2 * padded * padded * 2
                + 2 * tb * padded * 2
                + 2 * tb * padded * 4
                + 2 * padded * 4
                + 3 * tb * padded * 4)

    cands = (512, 256, 128, 64, 32, 16, 8)
    b8 = _round_up(B, 8)

    use_packed = False
    tb = None
    if not force_general:
        for c in cands:
            t = min(c, b8)
            if packed_bytes(t) <= VMEM_BUDGET:
                use_packed, tb = True, t
                break
    if tb is None:
        for c in cands:
            t = min(c, b8)
            if general_bytes(t) <= VMEM_BUDGET:
                tb = t
                break
    if tb is None:
        # TODO(synk): K-tile the (D, D) weight (reduction grid axis + f32 acc
        # scratch) for very large D instead of shrinking the batch tile.
        tb = min(8, b8)

    # keep >= 2 grid steps on a parallel axis so v7x megacore can engage
    if B > 8 and _round_up(B, tb) // tb < 2 and (use_packed or num_repeat == 1):
        tb = min(tb, _round_up((B + 1) // 2, 8))

    b_pad = _round_up(B, tb)
    if b_pad > B:
        x = jnp.pad(x, ((0, b_pad - B), (0, 0)))

    usage = packed_bytes(tb) if use_packed else general_bytes(tb)
    vmem_limit = int(max(32 * 1024 * 1024, usage + 4 * 1024 * 1024))

    flops = int(2 * b_pad * padded * out_w)
    decay = float(decay_coeff)

    if use_packed:
        # pack repeats along the lane axis: x read once, one wide matmul
        m_all = jnp.swapaxes(m, 0, 1).reshape(padded, out_w)   # (D, nr*D)
        cost = pl.CostEstimate(
            flops=flops, transcendentals=0,
            bytes_accessed=int(b_pad * padded * 2 + padded * out_w * 2
                               + out_w * 4 + b_pad * out_w * 4))
        out = pl.pallas_call(
            functools.partial(_bh4_packed_kernel, decay=decay, nr=num_repeat),
            out_shape=jax.ShapeDtypeStruct((b_pad, out_w), jnp.float32),
            grid=(b_pad // tb,),
            in_specs=[
                pl.BlockSpec((tb, padded), lambda b: (b, 0)),
                pl.BlockSpec((padded, out_w), lambda b: (0, 0)),
                pl.BlockSpec((1, out_w), lambda b: (0, 0)),
            ],
            out_specs=pl.BlockSpec((tb, out_w), lambda b: (b, 0)),
            compiler_params=pltpu.CompilerParams(
                dimension_semantics=("parallel",),
                vmem_limit_bytes=vmem_limit),
            cost_estimate=cost,
        )(x, m_all, bias_pad)
    else:
        # fallback: repeat outermost so the (D, D) weight block stays
        # VMEM-resident across batch tiles; output written in final layout.
        cost = pl.CostEstimate(
            flops=flops, transcendentals=0,
            bytes_accessed=int(num_repeat * b_pad * padded * 2
                               + padded * out_w * 2
                               + out_w * 4 + b_pad * out_w * 4))
        out = pl.pallas_call(
            functools.partial(_bh4_repeat_kernel, decay=decay),
            out_shape=jax.ShapeDtypeStruct((b_pad, out_w), jnp.float32),
            grid=(num_repeat, b_pad // tb),
            in_specs=[
                pl.BlockSpec((tb, padded), lambda r, b: (b, 0)),
                pl.BlockSpec((1, padded, padded), lambda r, b: (r, 0, 0)),
                pl.BlockSpec((1, padded), lambda r, b: (0, r)),
            ],
            out_specs=pl.BlockSpec((tb, padded), lambda r, b: (b, r)),
            compiler_params=pltpu.CompilerParams(
                dimension_semantics=("parallel", "parallel"),
                vmem_limit_bytes=vmem_limit),
            cost_estimate=cost,
        )(x, m, bias_pad)

    # glue: crop padded rows / columns (bias already fused)
    y = out[:B, :out_dim]
    return y.reshape(*lead_shape, out_dim)


# -------------------------- pure-JAX reference check -------------------------

def _bh4_ref(x_pad, w):
    B, D = x_pad.shape
    nr, _, nb, bs, _ = w.shape
    v = jnp.broadcast_to(x_pad.reshape(B, 1, nb, bs), (B, nr, nb, bs))
    for i in range(4):
        v = jnp.einsum('brks,rkts->brkt', v, w[:, i])
        v = _fwht(v.reshape(B, nr, D)).reshape(B, nr, nb, bs)
    return v.reshape(B, nr * D)


def _forward_ref(xs, weight, bias, *, in_dim, out_dim, block_size, decay_coeff=0.7):
    lead_shape = xs.shape[:-1]
    x = xs.reshape(-1, xs.shape[-1]).astype(jnp.float32)
    padded = int(2 ** math.ceil(math.log2(in_dim)))
    num_repeat = max(1, int(math.ceil(out_dim / padded)))
    if x.shape[-1] < padded:
        x = jnp.pad(x, ((0, 0), (0, padded - x.shape[-1])))
    y = decay_coeff * _bh4_ref(x, weight) + (1.0 - decay_coeff) * jnp.tile(x, (1, num_repeat))
    y = y[:, :out_dim] + bias
    return y.reshape(*lead_shape, out_dim)


# ----------------------------------- main ------------------------------------

if __name__ == "__main__":
    def run_case(name, *, in_dim, out_dim, block_size, batch, seq,
                 decay_coeff=0.7, force_general=False):
        padded = int(2 ** math.ceil(math.log2(in_dim)))
        num_repeat = max(1, int(math.ceil(out_dim / padded)))
        num_block = padded // block_size
        coeff = math.sqrt(block_size * padded)

        key = jax.random.PRNGKey(0)
        k_w, k_b, k_x = jax.random.split(key, 3)
        weight = jax.random.normal(
            k_w, (num_repeat, 4, num_block, block_size, block_size),
            jnp.float32) / coeff
        bias = 0.1 * jax.random.normal(k_b, (out_dim,), jnp.float32)
        xs = jax.random.normal(k_x, (batch, seq, in_dim), jnp.float32)

        y = bh4_module_forward(xs, weight, bias, in_dim=in_dim, out_dim=out_dim,
                               block_size=block_size, decay_coeff=decay_coeff,
                               force_general=force_general)
        y = jax.block_until_ready(y)
        assert y.shape == (batch, seq, out_dim)

        y_ref = _forward_ref(xs, weight, bias, in_dim=in_dim, out_dim=out_dim,
                             block_size=block_size, decay_coeff=decay_coeff)
        # bf16 MXU inputs / bf16 folded weights with f32 accumulation.
        assert jnp.allclose(y, y_ref, rtol=5e-2, atol=5e-2), f"{name}: mismatch vs reference"

    # small-D lane-packed path (padded < 128), repeats packed along lanes.
    run_case("toy", in_dim=32, out_dim=64, block_size=8, batch=2, seq=8)

    # packed path with padded >= 128 (new default): x read once, wide matmul.
    run_case("packed128", in_dim=128, out_dim=256, block_size=32, batch=2, seq=40)

    # per-repeat fallback path (forced): exercises feature padding (96 -> 128),
    # output crop (256 -> 200), row padding, fused per-repeat bias blocks.
    run_case("general_fallback", in_dim=96, out_dim=200, block_size=32,
             batch=3, seq=50, force_general=True)

    # same config through the default packed path.
    run_case("general_packed", in_dim=96, out_dim=200, block_size=32,
             batch=3, seq=50)

    print("KERNEL_OK")
</pallas_src>

<mosaic_0001>
module attributes {stable_mosaic.version = 11 : i64} {
  func.func @_bh4_packed_kernel(%arg0: i32, %arg1: memref<8x32xbf16, #tpu.memory_space<vmem>>, %arg2: memref<32x64xbf16, #tpu.memory_space<vmem>>, %arg3: memref<1x64xf32, #tpu.memory_space<vmem>>, %arg4: memref<8x64xf32, #tpu.memory_space<vmem>>) attributes {dimension_semantics = [#tpu.dimension_semantics<parallel>], iteration_bounds = array<i64: 2>, scalar_prefetch = 0 : i64, scratch_operands = 0 : i64, tpu.core_type = #tpu.core_type<tc>, window_params = [{transform_indices = @transform_0, window_bounds = array<i64: 8, 32>}, {pipeline_mode = #tpu.pipeline_mode<synchronous>, transform_indices = @transform_1, window_bounds = array<i64: 32, 64>}, {pipeline_mode = #tpu.pipeline_mode<synchronous>, transform_indices = @transform_2, window_bounds = array<i64: 1, 64>}, {transform_indices = @transform_3, window_bounds = array<i64: 8, 64>}]} {
    %c0 = arith.constant 0 : index
    %c0_0 = arith.constant 0 : index
    %0 = vector.load %arg1[%c0, %c0_0] : memref<8x32xbf16, #tpu.memory_space<vmem>>, vector<8x32xbf16>
    %c0_1 = arith.constant 0 : index
    %c0_2 = arith.constant 0 : index
    %1 = vector.load %arg2[%c0_1, %c0_2] : memref<32x64xbf16, #tpu.memory_space<vmem>>, vector<32x64xbf16>
    %cst = arith.constant dense<0.000000e+00> : vector<8x64xf32>
    %2 = tpu.matmul %0, %1, %cst {dimension_numbers = #tpu.dot_dimension_numbers<[1], [0], [0], [1], [0, 0, 1, 1], [], []>} : vector<8x32xbf16>, vector<32x64xbf16>, vector<8x64xf32> -> vector<8x64xf32>
    %3 = arith.extf %0 : vector<8x32xbf16> to vector<8x32xf32>
    %4 = tpu.concatenate %3, %3 in 1 : vector<8x32xf32>, vector<8x32xf32> -> vector<8x64xf32>
    %cst_3 = arith.constant 0.699999988 : f32
    %5 = vector.broadcast %cst_3 : f32 to vector<8x64xf32>
    %6 = arith.mulf %5, %2 : vector<8x64xf32>
    %cst_4 = arith.constant 3.000000e-01 : f32
    %7 = vector.broadcast %cst_4 : f32 to vector<8x64xf32>
    %8 = arith.mulf %7, %4 : vector<8x64xf32>
    %9 = arith.addf %6, %8 : vector<8x64xf32>
    %c0_5 = arith.constant 0 : index
    %c0_6 = arith.constant 0 : index
    %10 = vector.load %arg3[%c0_5, %c0_6] : memref<1x64xf32, #tpu.memory_space<vmem>>, vector<1x64xf32>
    %11 = vector.broadcast %10 : vector<1x64xf32> to vector<8x64xf32>
    %12 = arith.addf %9, %11 : vector<8x64xf32>
    %c0_7 = arith.constant 0 : index
    %c0_8 = arith.constant 0 : index
    %13 = vector.load %arg4[%c0_7, %c0_8] : memref<8x64xf32, #tpu.memory_space<vmem>>, vector<8x64xf32>
    tpu.vector_store %arg4[%c0_7, %c0_8], %12 {strides = array<i32>} : memref<8x64xf32, #tpu.memory_space<vmem>>, vector<8x64xf32>,
    return
  }
  func.func @transform_0(%arg0: i32) -> (i32, i32) {
    %c0_i32 = arith.constant 0 : i32
    %c0_i32_0 = arith.constant 0 : i32
    return %arg0, %c0_i32 : i32, i32
  }
  func.func @transform_1(%arg0: i32) -> (i32, i32) {
    %c0_i32 = arith.constant 0 : i32
    %c0_i32_0 = arith.constant 0 : i32
    %c0_i32_1 = arith.constant 0 : i32
    return %c0_i32, %c0_i32_0 : i32, i32
  }
  func.func @transform_2(%arg0: i32) -> (i32, i32) {
    %c0_i32 = arith.constant 0 : i32
    %c0_i32_0 = arith.constant 0 : i32
    %c0_i32_1 = arith.constant 0 : i32
    return %c0_i32, %c0_i32_0 : i32, i32
  }
  func.func @transform_3(%arg0: i32) -> (i32, i32) {
    %c0_i32 = arith.constant 0 : i32
    %c0_i32_0 = arith.constant 0 : i32
    return %arg0, %c0_i32 : i32, i32
  }
}

</mosaic_0001>

<bundles_post_ra>
// kernel: tpu_custom_call.1
= control target key start
LH: loop header
LB: loop body
LE: loop exit
PB: predicated region body
PF: predicated region fallthrough
CT: control target
= control target key end

     0   :  { %8 = vsyncpa [#allocation3], 0  ;;  %s827_s0 = inlined_call_operand.hbm [shape: bf16[16,32], index: 0, kind: input, shape index: {}]   ;;  %s828_s1 = inlined_call_operand.hbm [shape: bf16[32,64], index: 1, kind: input, shape index: {}]   ;;  %s829_s2 = inlined_call_operand.vmem [shape: f32[1,64], index: 2, kind: input, shape index: {}]   ;;  %s830_s3 = inlined_call_operand.hbm [shape: f32[16,64], index: 3, kind: output, shape index: {}]  }
   0x1   :  { %10 = vsyncpa [#allocation3 + $0x1], 0 }
   0x2   :  { %11 = vsyncpa [#allocation6], 0 }
   0x3   :  { %12 = vsyncpa [#allocation4], 0 }
   0x4   :  { %14 = vsyncpa [#allocation4 + $0x1], 0  ;;  %s627_s12 = smov 0   ;;  %s629_s13 = smov 0  }
   0x5   :  { %s631_s14 = smov 0   ;;  %s633_s15 = smov 0  }
   0x6 LB: > { %s648_s16 = sadd.s32 4294967295, %s597_s15   ;;  %s376_s17 = sadd.s32 4294967294, %s597_s15   ;;  %s597_s15 = sphi %s633_s15, %s850_s15   ;;  %s593_s14 = sphi %s631_s14, %s849_s14   ;;  %s589_s13 = sphi %s629_s13, %s848_s13   ;;  %s585_s12 = sphi %s627_s12, %s847_s12  }
   0x7   : > { %p40_p0 = scmp.ne.s32.totalorder %s589_s13, %s585_s12  ;;  %p831_p1 = scmp.eq.s32.totalorder %s648_s16, 0 }
   0x8   : > { %p112_p3 = scmp.eq.s32.totalorder %s376_s17, 1  ;;  %p377_p5 = scmp.ge.s32.totalorder %s597_s15, 1 }
   0x9   : > { %p657_p4 = por %p831_p1, %p40_p0  ;;  %p119_p7 = scmp.lt.s32.totalorder %s597_s15, 3 }
   0xa   : > { %p662_p6 = por %p112_p3, %p40_p0  ;;  %s599_s21 = smov [#allocation5]  }
   0xb   : > { %s834_s18 = scalar_select %p657_p4, 1, 0 }
   0xc   : > { %s835_s19 = scalar_select %p662_p6, 1, 0 }
   0xd   : > { %p667_p8 = pnand %p377_p5, %p119_p7  ;;  %s131_s22 = sshll.u32 %s599_s21, 4  ;;  %s671_s22 = int_to_ptr.vmem [resolvable:$true] %s131_s22 }
   0xe   : > { %s683_s24 = sadd.s32 1, %s597_s15   ;;  %s27_s25 = sadd.s32 1, %s593_s14 }
   0xf   : > { %s836_s20 = scalar_select %p667_p8, 1, 0 }
  0x10   : > { %p413_p9 = pneg %p667_p8  ;;  %s24_s26 = ssub.s32 %s597_s15, %s683_s24 }
  0x11   : > { %s469_s29 = scalar_lea.hbm %s828_s1, 256 }
  0x12   : > { %p678_p11 = pnand %p413_p9, %p831_p1  ;;  %p470_p12 = scmp.ne.s32.totalorder %s828_s1, %s469_s29 }
  0x13   : > { %p476_p5 = scmp.lt.u32.totalorder %s469_s29, %s828_s1 }
  0x14   : > { %p471_p13 = pneg %p678_p11 }
  0x16   : > { %p472_p0 = pnand %p471_p13, %p470_p12 }
  0x18   : > { %p473_p3 = pneg %p472_p0 }
  0x1a   : > { %p478_p7 = pnand %p476_p5, %p473_p3 }
  0x1c   : > { %481 = shalt.err (!%p478_p7)
}
  0x1d   : > { %s482_s7 = scalar_lea.vmem %s671_s22, 256  ;;  %p490_p2 = scmp.lt.s32.totalorder %s671_s22, %s671_s22 }
  0x1e   : > { %p483_p9 = scmp.ne.s32.totalorder %s671_s22, %s482_s7  ;;  %p491_p6 = scmp.lt.s32.totalorder %s482_s7, %s482_s7 }
  0x20   : > { %p485_p10 = pnand %p483_p9, %p471_p13  ;;  %p492_p4 = por %p491_p6, %p490_p2 }
  0x22   : > { %p486_p1 = pneg %p485_p10 }
  0x24   : > { %p493_p8 = pnand %p492_p4, %p486_p1 }
  0x26   : > { %496 = shalt.err (!%p493_p8)
}
  0x27   : > { %s600_s8 = smov 64   ;;  %s601_s9 = smov 4  }
  0x28   : > { %416 = dma.hbm_to_vmem [thread:$0]  (!%p678_p11), %s828_s1, 256, %s671_s22, [#allocation6], %s600_s8, %s600_s8, %s601_s9  }
  0x29   : > { %p25_p2 = scmp.eq.s32.totalorder %s24_s26, 0  ;;  %p34_p1 = scmp.ne.s32.totalorder %s593_s14, %s589_s13 }
  0x2a   : > { %p35_p4 = scmp.eq.s32.totalorder %s597_s15, 0  ;;  %p426_p6 = scmp.lt.s32.totalorder %s597_s15, 2 }
  0x2b   : > { %s714_s17 = scalar_select %p25_p2, %s593_s14, %s27_s25  }
  0x2c   : > { %p36_p8 = por %p35_p4, %p34_p1  ;;  %p838_p10 = scmp.eq.s32.totalorder %s648_s16, 1 }
  0x2d   : > { %s148_s27 = sand.u32 1, %s593_s14   ;;  %s381_s28 = sshll.u32 %s597_s15, 6 }
  0x2e   : > { %p718_p12 = por %p838_p10, %p34_p1  ;;  %s380_s29 = sshll.u32 %s148_s27, 2 }
  0x2f   : > { %s727_s4 = scalar_lea.hbm %s827_s0, %s381_s28  ;;  %s152_s22 = scalar_lea.vmem [#allocation2], %s380_s29 }
  0x30   : > { %s159_s25 = sshll.u32 %s152_s22, 4  ;;  %p729_p11 = pnand %p426_p6, %p36_p8  ;;  %s733_s25 = int_to_ptr.vmem [resolvable:$true] %s159_s25 }
  0x31   : > { %s149_s5 = scalar_lea.sflag [#allocation3], %s148_s27  ;;  %s497_s6 = scalar_lea.hbm %s727_s4, 64 }
  0x32   : > { %p498_p13 = scmp.ne.s32.totalorder %s727_s4, %s497_s6  ;;  %p499_p0 = pneg %p729_p11 }
  0x33   : > { %s502_s9 = scalar_lea.hbm %s827_s0, 128  ;;  %p503_p7 = scmp.lt.u32.totalorder %s727_s4, %s827_s0 }
  0x34   : > { %p500_p3 = pnand %p499_p0, %p498_p13  ;;  %p504_p9 = scmp.lt.u32.totalorder %s502_s9, %s497_s6 }
  0x35   : > { %p506_p1 = scmp.lt.u32.totalorder %s497_s6, %s727_s4 }
  0x36   : > { %p501_p5 = pneg %p500_p3  ;;  %p505_p2 = por %p504_p9, %p503_p7 }
  0x38   : > { %p507_p4 = por %p506_p1, %p505_p2 }
  0x3a   : > { %p508_p6 = pnand %p507_p4, %p501_p5 }
  0x3c   : > { %511 = shalt.err (!%p508_p6)
}
  0x3d   : > { %s512_s27 = scalar_lea.vmem %s733_s25, 64  ;;  %s602_s28 = smov [#allocation2]  }
  0x3e   : > { %p513_p8 = scmp.ne.s32.totalorder %s733_s25, %s512_s27  ;;  %s517_s29 = sshll.u32 %s602_s28, 4  ;;  %s518_s29 = int_to_ptr.vmem [resolvable:$false] %s517_s29 }
  0x3f   : > { %s519_s23 = scalar_lea.vmem %s518_s29, 128  ;;  %p520_p3 = scmp.lt.s32.totalorder %s733_s25, %s518_s29 }
  0x40   : > { %p515_p10 = pnand %p513_p8, %p499_p0  ;;  %p521_p7 = scmp.lt.s32.totalorder %s519_s23, %s512_s27 }
  0x42   : > { %p516_p13 = pneg %p515_p10  ;;  %p522_p9 = por %p521_p7, %p520_p3 }
  0x44   : > { %p523_p2 = pnand %p522_p9, %p516_p13 }
  0x46   : > { %526 = shalt.err (!%p523_p2)
}
  0x47   : > { %420 = dma.hbm_to_vmem [thread:$0]  (!%p729_p11), %s727_s4, 64, %s733_s25, %s149_s5  }
  0x48   : > { %p841_p5 = scmp.ne.s32.totalorder %s836_s20, 0 }
  0x49   : > { %s763_s30 = sand.u32 (!%p841_p5), 1, %s589_s13   ;;  %p842_p0 = scmp.ne.s32.totalorder (!%p841_p5), %s834_s18, 0 }
  0x4a   : > { %168 = sbr.rel (%p841_p5) target bundleno = 326 (0x146), region = 32  ;;  %s383_s22 = sshll.u32 (!%p841_p5), %s763_s30, 2 }
  0x4b   : > { %s171_s6 = scalar_lea.sflag (!%p841_p5), [#allocation3], %s763_s30  ;;  %s174_s7 = scalar_lea.vmem (!%p841_p5), [#allocation2], %s383_s22 }
  0x51   : > { %572 = dma.done.wait (%p842_p0), %s171_s6, 64  }
  0x52   : > { %574 = vsyncadd (%p842_p0), %s171_s6, 4294967232  ;;  %p843_p1 = scmp.eq.s32.totalorder %s648_s16, 0 }
  0x54   : > { %576 = dma.done.wait (%p843_p1), [#allocation6], 256   ;;  %p844_p11 = pmov %p843_p1 }
  0x55   : > { %v603_v0 = vmov 0.0   ;;  %vm604_vm0 = vmmov 0   ;;  %v467_v1 = vld [vmem:[#allocation5] sm:$0xff]   ;;  %v468_v2 = vld [vmem:[#allocation5 + $0x8] sm:$0xff]   ;;  %v202_v3 = vld [vmem:[%s174_s7] sm:$0xf] }
  0x56   : > { %578 = vsyncadd (%p844_p11), [#allocation6], 4294967040  ;;  %397 = vmatprep.subr.bf16.mxu0 %v603_v0  ;;  %401 = vmatprep.mubr.msk.bf16.mxu0 %vm604_vm0, %v603_v0  ;;  %v263_v4 = vunpack.c.l.bf16 %v202_v3  ;;  %s605_s18 = smov 32   ;;  %vm219_vm1 = vcmask 261120   ;;  %s385_s20 = sshll.u32 %s763_s30, 3  ;;  %vm280_vm2 = vcmask 523264  }
  0x57   : > { %398 = vmatpush3.bf16.msra.mxu0 %v467_v1  ;;  %v389_v11 = vld [vmem:[%s829_s2] ss:$0 sm:$0xff]  ;;  %s391_s26 = sshll.u32 %s648_s16, 7  ;;  %s200_s5 = scalar_lea.vmem [#allocation7], %s385_s20 }
  0x58   : > { %399 = vmatprep.subr.bf16.mxu0 %v603_v0  ;;  %265 = vrot.lane.b32.xlu0 %v263_v4, %s605_s18  ;;  %s296_s8 = sshll.u32 %s200_s5, 4  ;;  %s783_s11 = scalar_lea.hbm %s830_s3, %s391_s26  ;;  %s785_s8 = int_to_ptr.vmem [resolvable:$true] %s296_s8 }
  0x59   : > { %s283_s27 = scalar_lea.sflag [#allocation4], %s763_s30  ;;  %s527_s28 = scalar_lea.vmem %s785_s8, 128 }
  0x5a   : > { %p528_p4 = scmp.ne.s32.totalorder %s785_s8, %s527_s28  ;;  %s606_s16 = smov [#allocation7]  }
  0x5b   : > { %400 = vmatpush3.bf16.msra.mxu0 %v468_v2  ;;  %s531_s29 = sshll.u32 %s606_s16, 4  ;;  %s532_s29 = int_to_ptr.vmem [resolvable:$false] %s531_s29 }
  0x5c   : > { %p529_p6 = pnand %p528_p4, %p718_p12  ;;  %s533_s23 = scalar_lea.vmem %s532_s29, 256 }
  0x5d   : > { %p534_p10 = scmp.lt.s32.totalorder %s785_s8, %s532_s29  ;;  %p535_p13 = scmp.lt.s32.totalorder %s533_s23, %s527_s28 }
  0x5e   : > { %402 = vmatmul.mubr.msk.bf16.vlgmr.msra.gmra.mrb[0].mxu0 %vm219_vm1, %v202_v3  ;;  %p530_p8 = pneg %p529_p6 }
  0x5f   : > { %p536_p3 = por %p535_p13, %p534_p10 }
  0x61   : > { %p537_p7 = pnand %p536_p3, %p530_p8 }
  0xca   : > { %v266_v5 = vpop.permute.xlu0 %265 }
  0xcb   : > { %v268_v6 = vsel %vm219_vm1, %v263_v4, %v266_v5 }
  0xcc   : > { %v270_v7 = vmul.f32 0.3, %v268_v6 }
 0x131   : > { %v257_v8 = vpop.f32.mrb[0].mxu0 }
 0x132   : > { %v269_v9 = vmul.f32 0.7, %v257_v8  ;;  %v403_v10 = vpop.f32.mrb[1].mxu0 }
 0x133   : > { %v260_v12 = vpop.f32.mrb[2].mxu0 }
 0x134   : > { %v271_v13 = vadd.f32 %v270_v7, %v269_v9  ;;  %v404_v14 = vpop.f32.mrb[3].mxu0 }
 0x136   : > { %v279_v15 = vadd.f32 %v389_v11, %v271_v13 }
 0x138   : > { %281 = vst.msk [vmem:[%s200_s5] sm:$0xff] %vm280_vm2, %v279_v15 }
 0x139   : > { %540 = shalt.err (!%p537_p7)
}
 0x13a   : > { %s541_s30 = scalar_lea.hbm %s783_s11, 128  ;;  %s545_s7 = scalar_lea.hbm %s830_s3, 256 }
 0x13b   : > { %p542_p9 = scmp.ne.s32.totalorder %s783_s11, %s541_s30  ;;  %p546_p0 = scmp.lt.u32.totalorder %s783_s11, %s830_s3 }
 0x13c   : > { %p547_p1 = scmp.lt.u32.totalorder %s545_s7, %s541_s30  ;;  %p549_p4 = scmp.lt.u32.totalorder %s541_s30, %s783_s11 }
 0x13d   : > { %p543_p2 = pnand %p542_p9, %p718_p12 }
 0x13e   : > { %p548_p11 = por %p547_p1, %p546_p0 }
 0x13f   : > { %p544_p5 = pneg %p543_p2 }
 0x140   : > { %p550_p6 = por %p549_p4, %p548_p11 }
 0x142   : > { %p551_p8 = pnand %p550_p6, %p544_p5 }
 0x144   : > { %554 = shalt.err (!%p551_p8)
}
 0x145   : > { %411 = dma.vmem_to_hbm [thread:$0]  (%p718_p12), %s785_s8, 128, %s783_s11, %s283_s27  }
 0x146 PF: > { %s308_s4 = sand.u32 1, %s585_s12   ;;  %p845_p10 = scmp.ne.s32.totalorder %s835_s19, 0 }
 0x147   : > { %p846_p13 = scmp.ge.s32.totalorder %s597_s15, 2  ;;  %s309_s25 = scalar_lea.sflag [#allocation4], %s308_s4 }
 0x149   : > { %p422_p3 = pnand %p846_p13, %p845_p10 }
 0x14b   : > { %580 = dma.done.wait (!%p422_p3), %s309_s25, 128  }
 0x14c   : > { %582 = vsyncadd (!%p422_p3), %s309_s25, 4294967168  ;;  %p17_p7 = scmp.ge.s32.totalorder %s683_s24, 4   ;;  %s847_s12 = smov %s589_s13 }
 0x14d   : > { %s848_s13 = smov %s593_s14  ;;  %s849_s14 = smov %s714_s17 }
 0x14e   : > { %s850_s15 = smov %s683_s24  ;;  %19 = sbr.rel (!%p17_p7) target bundleno = 6 (0x6), region = 81 }
 0x155   :  { %314 = vsyncpa [#allocation3], 1 }
 0x156   :  { %316 = vsyncpa [#allocation3 + $0x1], 1 }
 0x157   :  { %317 = vsyncpa [#allocation6], 1 }
 0x158   :  { %318 = vsyncpa [#allocation4], 1 }
 0x159   :  { %320 = vsyncpa [#allocation4 + $0x1], 1 }

</bundles_post_ra>
